<compile_context>
chip_gen: v6e
topology: v6e:2x2x1
jax: 0.10.0
libtpu: 0.0.40
codegen_flags: <defaults>
</compile_context>

<pallas_src>
import functools

import jax
import jax.numpy as jnp
from jax import lax
from jax.experimental import pallas as pl
from jax.experimental.pallas import tpu as pltpu


def _round_up(x, m):
    return ((x + m - 1) // m) * m


def ffn_kernel(x_ref, w1_ref, b1_ref, w2_ref, b2_ref, o_ref, acc_ref):
    # x_ref : (tm, dm_pad)        bf16
    # w1_ref: (tf, dm_pad)        bf16   (chunk of W1, PyTorch layout [d_ff, d_model])
    # b1_ref: (1, tf)             f32
    # w2_ref: (dm_pad, tf)        bf16   (chunk of W2, PyTorch layout [d_model, d_ff])
    # b2_ref: (1, dm_pad)         f32
    # o_ref : (tm, dm_pad)        x.dtype
    # acc_ref: (tm, dm_pad)       f32 VMEM scratch, resident across the d_ff axis
    f = pl.program_id(1)

    @pl.when(f == 0)
    def _():
        acc_ref[...] = jnp.zeros_like(acc_ref)

    # h_f = relu(x @ W1_f^T + b1_f)   -> (tm, tf), f32 accumulation on the MXU.
    h = lax.dot_general(
        x_ref[...], w1_ref[...],
        dimension_numbers=(((1,), (1,)), ((), ())),
        preferred_element_type=jnp.float32,
    )
    h = jnp.maximum(h + b1_ref[...], 0.0)
    # dropout: identity in eval mode.

    # acc += h_f @ W2_f^T             -> (tm, dm_pad)
    # Explicit bf16 cast of the intermediate before the second MXU pass.
    acc_ref[...] += lax.dot_general(
        h.astype(jnp.bfloat16), w2_ref[...],
        dimension_numbers=(((1,), (1,)), ((), ())),
        preferred_element_type=jnp.float32,
    )

    @pl.when(f == pl.num_programs(1) - 1)
    def _():
        o_ref[...] = (acc_ref[...] + b2_ref[...]).astype(o_ref.dtype)


@functools.partial(jax.jit, static_argnames=("tm", "tf"))
def feed_forward(x, w1, b1, w2, b2, *, tm=256, tf=512):
    """x: [batch, seq, d_model]; w1: [d_ff, d_model]; b1: [d_ff];
       w2: [d_model, d_ff]; b2: [d_model]   (PyTorch nn.Linear conventions)."""
    batch, seq, d_model = x.shape
    d_ff = w1.shape[0]
    M = batch * seq

    # Effective tile sizes: don't over-pad tiny problems, keep (8,128) alignment.
    tm_eff = min(tm, _round_up(M, 8))
    tf_eff = min(tf, _round_up(d_ff, 128))
    m_pad = _round_up(M, tm_eff)
    dff_pad = _round_up(d_ff, tf_eff)
    dm_pad = _round_up(d_model, 128)

    # bf16 operands for the MXU; zero-padding keeps the math exact on the
    # original region (padded rows/cols contribute 0 and are sliced off).
    x2 = jnp.pad(x.reshape(M, d_model).astype(jnp.bfloat16),
                 ((0, m_pad - M), (0, dm_pad - d_model)))
    w1p = jnp.pad(w1.astype(jnp.bfloat16),
                  ((0, dff_pad - d_ff), (0, dm_pad - d_model)))
    w2p = jnp.pad(w2.astype(jnp.bfloat16),
                  ((0, dm_pad - d_model), (0, dff_pad - d_ff)))
    b1p = jnp.pad(b1.astype(jnp.float32), (0, dff_pad - d_ff)).reshape(1, dff_pad)
    b2p = jnp.pad(b2.astype(jnp.float32), (0, dm_pad - d_model)).reshape(1, dm_pad)

    grid = (m_pad // tm_eff, dff_pad // tf_eff)

    flops = 4 * m_pad * dm_pad * dff_pad  # two matmuls
    bytes_accessed = (x2.size + w1p.size + w2p.size) * 2 \
        + (b1p.size + b2p.size) * 4 + m_pad * dm_pad * x.dtype.itemsize

    out = pl.pallas_call(
        ffn_kernel,
        out_shape=jax.ShapeDtypeStruct((m_pad, dm_pad), x.dtype),
        grid_spec=pltpu.PrefetchScalarGridSpec(
            num_scalar_prefetch=0,
            grid=grid,
            in_specs=[
                pl.BlockSpec((tm_eff, dm_pad), lambda i, f: (i, 0)),   # x rows
                pl.BlockSpec((tf_eff, dm_pad), lambda i, f: (f, 0)),   # W1 chunk
                pl.BlockSpec((1, tf_eff), lambda i, f: (0, f)),        # b1 chunk
                pl.BlockSpec((dm_pad, tf_eff), lambda i, f: (0, f)),   # W2 chunk
                pl.BlockSpec((1, dm_pad), lambda i, f: (0, 0)),        # b2
            ],
            out_specs=pl.BlockSpec((tm_eff, dm_pad), lambda i, f: (i, 0)),
            scratch_shapes=[pltpu.VMEM((tm_eff, dm_pad), jnp.float32)],
        ),
        compiler_params=pltpu.CompilerParams(
            # M axis parallel (megacore on v7x), d_ff reduction axis arbitrary.
            dimension_semantics=("parallel", "arbitrary"),
            # Fits v7x's 64 MiB/TC; halve tf on v7x for very large d_model if needed.
            vmem_limit_bytes=64 * 1024 * 1024,
        ),
        cost_estimate=pl.CostEstimate(
            flops=flops, transcendentals=0, bytes_accessed=bytes_accessed),
    )(x2, w1p, b1p, w2p, b2p)

    return out[:M, :d_model].reshape(batch, seq, d_model)


if __name__ == "__main__":
    batch, seq, d_model, d_ff = 2, 8, 32, 256

    key = jax.random.PRNGKey(0)
    kx, kw1, kb1, kw2, kb2 = jax.random.split(key, 5)

    x = jax.random.normal(kx, (batch, seq, d_model), dtype=jnp.float32)
    # Shapes match nn.Linear(d_model, d_ff) / nn.Linear(d_ff, d_model).
    w1 = jax.random.normal(kw1, (d_ff, d_model), dtype=jnp.float32) * 0.05
    b1 = jax.random.normal(kb1, (d_ff,), dtype=jnp.float32) * 0.05
    w2 = jax.random.normal(kw2, (d_model, d_ff), dtype=jnp.float32) * 0.05
    b2 = jax.random.normal(kb2, (d_model,), dtype=jnp.float32) * 0.05

    # Reference in plain JAX with the same bf16-in / f32-accumulate numerics
    # (inference-mode dropout = identity).
    xb = x.reshape(-1, d_model).astype(jnp.bfloat16)
    h_ref = jnp.maximum(
        jnp.dot(xb, w1.astype(jnp.bfloat16).T, preferred_element_type=jnp.float32)
        + b1, 0.0)
    ref = (jnp.dot(h_ref.astype(jnp.bfloat16), w2.astype(jnp.bfloat16).T,
                   preferred_element_type=jnp.float32) + b2)
    ref = ref.reshape(batch, seq, d_model).astype(x.dtype)

    # 1) default tiles (single block at these toy shapes)
    out = feed_forward(x, w1, b1, w2, b2)
    jax.block_until_ready(out)
    assert jnp.allclose(out, ref, atol=1e-2, rtol=1e-2), "mismatch (default tiles)"

    # 2) small tiles to exercise multi-block M axis + blocked d_ff reduction
    out2 = feed_forward(x, w1, b1, w2, b2, tm=8, tf=128)
    jax.block_until_ready(out2)
    assert jnp.allclose(out2, ref, atol=1e-2, rtol=1e-2), "mismatch (small tiles)"

    print("KERNEL_OK")
</pallas_src>

<mosaic_0001>
module attributes {stable_mosaic.version = 11 : i64} {
  func.func @ffn_kernel(%arg0: i32, %arg1: i32, %arg2: memref<16x128xbf16, #tpu.memory_space<vmem>>, %arg3: memref<256x128xbf16, #tpu.memory_space<vmem>>, %arg4: memref<1x256xf32, #tpu.memory_space<vmem>>, %arg5: memref<128x256xbf16, #tpu.memory_space<vmem>>, %arg6: memref<1x128xf32, #tpu.memory_space<vmem>>, %arg7: memref<16x128xf32, #tpu.memory_space<vmem>>, %arg8: memref<16x128xf32, #tpu.memory_space<vmem>>) attributes {dimension_semantics = [#tpu.dimension_semantics<parallel>, #tpu.dimension_semantics<arbitrary>], iteration_bounds = array<i64: 1, 1>, scalar_prefetch = 0 : i64, scratch_operands = 1 : i64, tpu.core_type = #tpu.core_type<tc>, window_params = [{transform_indices = @transform_0, window_bounds = array<i64: 16, 128>}, {transform_indices = @transform_1, window_bounds = array<i64: 256, 128>}, {transform_indices = @transform_2, window_bounds = array<i64: 1, 256>}, {transform_indices = @transform_3, window_bounds = array<i64: 128, 256>}, {pipeline_mode = #tpu.pipeline_mode<synchronous>, transform_indices = @transform_4, window_bounds = array<i64: 1, 128>}, {transform_indices = @transform_5, window_bounds = array<i64: 16, 128>}]} {
    %c0_i32 = arith.constant 0 : i32
    %0 = arith.cmpi eq, %arg1, %c0_i32 : i32
    %1 = arith.extui %0 : i1 to i32
    %c0_i32_0 = arith.constant 0 : i32
    %2 = arith.cmpi ne, %1, %c0_i32_0 : i32
    scf.if %2 {
      %cst_16 = arith.constant 0.000000e+00 : f32
      %20 = vector.broadcast %cst_16 : f32 to vector<16x128xf32>
      %c0_17 = arith.constant 0 : index
      %c0_18 = arith.constant 0 : index
      %21 = vector.load %arg8[%c0_17, %c0_18] : memref<16x128xf32, #tpu.memory_space<vmem>>, vector<16x128xf32>
      tpu.vector_store %arg8[%c0_17, %c0_18], %20 {strides = array<i32>} : memref<16x128xf32, #tpu.memory_space<vmem>>, vector<16x128xf32>,
    } else {
    }
    %c0 = arith.constant 0 : index
    %c0_1 = arith.constant 0 : index
    %3 = vector.load %arg2[%c0, %c0_1] : memref<16x128xbf16, #tpu.memory_space<vmem>>, vector<16x128xbf16>
    %c0_2 = arith.constant 0 : index
    %c0_3 = arith.constant 0 : index
    %4 = vector.load %arg3[%c0_2, %c0_3] : memref<256x128xbf16, #tpu.memory_space<vmem>>, vector<256x128xbf16>
    %cst = arith.constant dense<0.000000e+00> : vector<16x256xf32>
    %5 = tpu.matmul %3, %4, %cst {dimension_numbers = #tpu.dot_dimension_numbers<[1], [1], [0], [0], [0, 0, 1, 0], [], []>} : vector<16x128xbf16>, vector<256x128xbf16>, vector<16x256xf32> -> vector<16x256xf32>
    %c0_4 = arith.constant 0 : index
    %c0_5 = arith.constant 0 : index
    %6 = vector.load %arg4[%c0_4, %c0_5] : memref<1x256xf32, #tpu.memory_space<vmem>>, vector<1x256xf32>
    %7 = vector.broadcast %6 : vector<1x256xf32> to vector<16x256xf32>
    %8 = arith.addf %5, %7 : vector<16x256xf32>
    %cst_6 = arith.constant 0.000000e+00 : f32
    %9 = vector.broadcast %cst_6 : f32 to vector<16x256xf32>
    %10 = arith.maximumf %8, %9 : vector<16x256xf32>
    %c0_7 = arith.constant 0 : index
    %c0_8 = arith.constant 0 : index
    %11 = vector.load %arg8[%c0_7, %c0_8] : memref<16x128xf32, #tpu.memory_space<vmem>>, vector<16x128xf32>
    %12 = arith.truncf %10 : vector<16x256xf32> to vector<16x256xbf16>
    %c0_9 = arith.constant 0 : index
    %c0_10 = arith.constant 0 : index
    %13 = vector.load %arg5[%c0_9, %c0_10] : memref<128x256xbf16, #tpu.memory_space<vmem>>, vector<128x256xbf16>
    %cst_11 = arith.constant dense<0.000000e+00> : vector<16x128xf32>
    %14 = tpu.matmul %12, %13, %cst_11 {dimension_numbers = #tpu.dot_dimension_numbers<[1], [1], [0], [0], [0, 0, 1, 0], [], []>} : vector<16x256xbf16>, vector<128x256xbf16>, vector<16x128xf32> -> vector<16x128xf32>
    %15 = arith.addf %11, %14 : vector<16x128xf32>
    %c0_12 = arith.constant 0 : index
    %c0_13 = arith.constant 0 : index
    %16 = vector.load %arg8[%c0_12, %c0_13] : memref<16x128xf32, #tpu.memory_space<vmem>>, vector<16x128xf32>
    tpu.vector_store %arg8[%c0_12, %c0_13], %15 {strides = array<i32>} : memref<16x128xf32, #tpu.memory_space<vmem>>, vector<16x128xf32>,
    %c0_i32_14 = arith.constant 0 : i32
    %17 = arith.cmpi eq, %arg1, %c0_i32_14 : i32
    %18 = arith.extui %17 : i1 to i32
    %c0_i32_15 = arith.constant 0 : i32
    %19 = arith.cmpi ne, %18, %c0_i32_15 : i32
    scf.if %19 {
      %c0_16 = arith.constant 0 : index
      %c0_17 = arith.constant 0 : index
      %20 = vector.load %arg8[%c0_16, %c0_17] : memref<16x128xf32, #tpu.memory_space<vmem>>, vector<16x128xf32>
      %c0_18 = arith.constant 0 : index
      %c0_19 = arith.constant 0 : index
      %21 = vector.load %arg6[%c0_18, %c0_19] : memref<1x128xf32, #tpu.memory_space<vmem>>, vector<1x128xf32>
      %22 = vector.broadcast %21 : vector<1x128xf32> to vector<16x128xf32>
      %23 = arith.addf %20, %22 : vector<16x128xf32>
      %c0_20 = arith.constant 0 : index
      %c0_21 = arith.constant 0 : index
      %24 = vector.load %arg7[%c0_20, %c0_21] : memref<16x128xf32, #tpu.memory_space<vmem>>, vector<16x128xf32>
      tpu.vector_store %arg7[%c0_20, %c0_21], %23 {strides = array<i32>} : memref<16x128xf32, #tpu.memory_space<vmem>>, vector<16x128xf32>,
    } else {
    }
    return
  }
  func.func @transform_0(%arg0: i32, %arg1: i32) -> (i32, i32) {
    %c0_i32 = arith.constant 0 : i32
    %c0_i32_0 = arith.constant 0 : i32
    return %arg0, %c0_i32 : i32, i32
  }
  func.func @transform_1(%arg0: i32, %arg1: i32) -> (i32, i32) {
    %c0_i32 = arith.constant 0 : i32
    %c0_i32_0 = arith.constant 0 : i32
    return %arg1, %c0_i32 : i32, i32
  }
  func.func @transform_2(%arg0: i32, %arg1: i32) -> (i32, i32) {
    %c0_i32 = arith.constant 0 : i32
    %c0_i32_0 = arith.constant 0 : i32
    return %c0_i32, %arg1 : i32, i32
  }
  func.func @transform_3(%arg0: i32, %arg1: i32) -> (i32, i32) {
    %c0_i32 = arith.constant 0 : i32
    %c0_i32_0 = arith.constant 0 : i32
    return %c0_i32, %arg1 : i32, i32
  }
  func.func @transform_4(%arg0: i32, %arg1: i32) -> (i32, i32) {
    %c0_i32 = arith.constant 0 : i32
    %c0_i32_0 = arith.constant 0 : i32
    %c0_i32_1 = arith.constant 0 : i32
    return %c0_i32, %c0_i32_0 : i32, i32
  }
  func.func @transform_5(%arg0: i32, %arg1: i32) -> (i32, i32) {
    %c0_i32 = arith.constant 0 : i32
    %c0_i32_0 = arith.constant 0 : i32
    return %arg0, %c0_i32 : i32, i32
  }
}

</mosaic_0001>

<bundles_post_ra>
// kernel: feed_forward.1
= control target key start
LH: loop header
LB: loop body
LE: loop exit
PB: predicated region body
PF: predicated region fallthrough
CT: control target
= control target key end

     0   :  { %v63_v33 = vlaneseq  ;;  %s621_s1 = inlined_call_operand.vmem [shape: bf16[256,128], index: 1, kind: input, shape index: {}]   ;;  %s622_s0 = inlined_call_operand.vmem [shape: bf16[16,128], index: 0, kind: input, shape index: {}]   ;;  %s623_s3 = inlined_call_operand.vmem [shape: bf16[128,256], index: 3, kind: input, shape index: {}]   ;;  %s624_s2 = inlined_call_operand.vmem [shape: f32[1,256], index: 2, kind: input, shape index: {}]   ;;  %s625_s4 = inlined_call_operand.vmem [shape: f32[1,128], index: 4, kind: input, shape index: {}]   ;;  %s626_s5 = inlined_call_operand.vmem [shape: f32[16,128], index: 5, kind: output, shape index: {}]  }
   0x1   :  { %v439_v0 = vld [vmem:[%s621_s1 + $0x78] sm:$0xff]   ;;  %v441_v2 = vld [vmem:[%s621_s1 + $0x70] sm:$0xff]   ;;  %v443_v4 = vld [vmem:[%s621_s1 + $0x68] sm:$0xff]  }
   0x2   :  { %v440_v1 = vld [vmem:[%s621_s1 + $0x38] sm:$0xff]   ;;  %421 = vmatprep.subr.bf16.mxu0 %v439_v0  ;;  %v442_v3 = vld [vmem:[%s621_s1 + $0x30] sm:$0xff]   ;;  %v444_v5 = vld [vmem:[%s621_s1 + $0x28] sm:$0xff]   ;;  %v64_v34 = vshrl.u32 %v63_v33, 7 }
   0x3   :  { %422 = vmatpush3.bf16.xpose.msra.mxu0 %v440_v1  ;;  %v445_v6 = vld [vmem:[%s621_s1 + $0x60] sm:$0xff]   ;;  %v456_v8 = vld [vmem:[%s623_s3 + $0x74] ss:$8 sps:$4 sm:$0xff]   ;;  %v458_v9 = vld [vmem:[%s623_s3 + $0x70] ss:$8 sps:$4 sm:$0xff]  }
   0x4   :  { %423 = vmatprep.subr.bf16.mxu0 %v441_v2  ;;  %v455_v7 = vld [vmem:[%s622_s0] sm:$0xff]   ;;  %322 = vmatprep.subr.bf16.mxu1 %v456_v8  ;;  %v447_v12 = vld [vmem:[%s621_s1 + $0x58] sm:$0xff]   ;;  %v449_v16 = vld [vmem:[%s621_s1 + $0x50] sm:$0xff]   ;;  %v69_v35 = vsub.s32 1, %v64_v34  ;;  %v65_v36 = vsub.s32 0, %v64_v34 }
   0x5   :  { %437 = vmatprep.mubr.bf16.mxu0 %v455_v7  ;;  %v459_v10 = vld [vmem:[%s623_s3 + $0x64] ss:$8 sps:$4 sm:$0xff]   ;;  %323 = vmatpush1.bf16.xpose.msra.mxu1 %v458_v9  ;;  %v461_v13 = vld [vmem:[%s623_s3 + $0x60] ss:$8 sps:$4 sm:$0xff]   ;;  %v462_v14 = vld [vmem:[%s623_s3 + $0x54] ss:$8 sps:$4 sm:$0xff]  }
   0x6   :  { %324 = vmatprep.subr.bf16.mxu1 %v459_v10  ;;  %v446_v11 = vld [vmem:[%s621_s1 + $0x20] sm:$0xff]   ;;  %v448_v15 = vld [vmem:[%s621_s1 + $0x18] sm:$0xff]   ;;  %v450_v19 = vld [vmem:[%s621_s1 + $0x10] sm:$0xff]  }
   0x7   :  { %v464_v17 = vld [vmem:[%s623_s3 + $0x50] ss:$8 sps:$4 sm:$0xff]   ;;  %v465_v18 = vld [vmem:[%s623_s3 + $0x44] ss:$8 sps:$4 sm:$0xff]   ;;  %v467_v21 = vld [vmem:[%s623_s3 + $0x40] ss:$8 sps:$4 sm:$0xff]  }
   0x8   :  { %v451_v20 = vld [vmem:[%s621_s1 + $0x48] sm:$0xff]   ;;  %v468_v22 = vld [vmem:[%s623_s3 + $0x34] ss:$8 sps:$4 sm:$0xff]   ;;  %v453_v24 = vld [vmem:[%s621_s1 + $0x40] sm:$0xff]  }
   0x9   :  { %v452_v23 = vld [vmem:[%s621_s1 + $0x8] sm:$0xff]   ;;  %v470_v25 = vld [vmem:[%s623_s3 + $0x30] ss:$8 sps:$4 sm:$0xff]   ;;  %v454_v27 = vld [vmem:[%s621_s1] sm:$0xff]  }
   0xa   :  { %v471_v26 = vld [vmem:[%s623_s3 + $0x24] ss:$8 sps:$4 sm:$0xff]   ;;  %v473_v28 = vld [vmem:[%s623_s3 + $0x20] ss:$8 sps:$4 sm:$0xff]   ;;  %v474_v29 = vld [vmem:[%s623_s3 + $0x14] ss:$8 sps:$4 sm:$0xff]  }
   0xb   :  { %424 = vmatpush3.bf16.xpose.msra.mxu0 %v442_v3  ;;  %v476_v30 = vld [vmem:[%s623_s3 + $0x10] ss:$8 sps:$4 sm:$0xff]   ;;  %v477_v31 = vld [vmem:[%s623_s3 + $0x4] ss:$8 sps:$4 sm:$0xff]   ;;  %v479_v32 = vld [vmem:[%s623_s3] ss:$8 sps:$4 sm:$0xff]  }
   0xc   :  { %425 = vmatprep.subr.bf16.mxu0 %v443_v4  ;;  %v61_v37 = vld [vmem:[%s624_s2] sm:$0x3] }
   0xd   :  { %325 = vmatpush1.bf16.xpose.msra.mxu1 %v461_v13  ;;  %v70_v39 = vrot.slane %v61_v37, %v69_v35  ;;  %v66_v40 = vrot.slane %v61_v37, %v65_v36  ;;  %v420_v54 = vld [vmem:[%s625_s4] ss:$0 sm:$0xff] }
   0xe   :  { %326 = vmatprep.subr.bf16.mxu1 %v462_v14 }
  0x13   :  { %426 = vmatpush3.bf16.xpose.msra.mxu0 %v444_v5 }
  0x14   :  { %427 = vmatprep.subr.bf16.mxu0 %v445_v6 }
  0x15   :  { %327 = vmatpush1.bf16.xpose.msra.mxu1 %v464_v17 }
  0x16   :  { %328 = vmatprep.subr.bf16.mxu1 %v465_v18 }
  0x1b   :  { %428 = vmatpush3.bf16.xpose.msra.mxu0 %v446_v11 }
  0x1c   :  { %429 = vmatprep.subr.bf16.mxu0 %v447_v12 }
  0x1d   :  { %329 = vmatpush1.bf16.xpose.msra.mxu1 %v467_v21 }
  0x1e   :  { %330 = vmatprep.subr.bf16.mxu1 %v468_v22 }
  0x23   :  { %430 = vmatpush3.bf16.xpose.msra.mxu0 %v448_v15 }
  0x24   :  { %431 = vmatprep.subr.bf16.mxu0 %v449_v16 }
  0x25   :  { %331 = vmatpush1.bf16.xpose.msra.mxu1 %v470_v25 }
  0x26   :  { %332 = vmatprep.subr.bf16.mxu1 %v471_v26 }
  0x2b   :  { %432 = vmatpush3.bf16.xpose.msra.mxu0 %v450_v19 }
  0x2c   :  { %433 = vmatprep.subr.bf16.mxu0 %v451_v20 }
  0x2d   :  { %333 = vmatpush1.bf16.xpose.msra.mxu1 %v473_v28 }
  0x2e   :  { %334 = vmatprep.subr.bf16.mxu1 %v474_v29 }
  0x33   :  { %434 = vmatpush3.bf16.xpose.msra.mxu0 %v452_v23 }
  0x34   :  { %435 = vmatprep.subr.bf16.mxu0 %v453_v24 }
  0x35   :  { %335 = vmatpush1.bf16.xpose.msra.mxu1 %v476_v30 }
  0x36   :  { %336 = vmatprep.subr.bf16.mxu1 %v477_v31 }
  0x3b   :  { %436 = vmatpush3.bf16.xpose.msra.mxu0 %v454_v27 }
  0x3d   :  { %337 = vmatpush1.bf16.xpose.msra.mxu1 %v479_v32 }
  0x42   :  { %438 = vmatmul.mubr.bf16.vlgmr.msra.gmra.mxu0 %v455_v7 }
 0x102   :  { %v209_v38 = vpop.f32.mrf.mxu0 }
 0x103   :  { %v210_v45 = vadd.f32 %v209_v38, %v66_v40 }
 0x104   :  { %v211_v41 = vpop.f32.mrf.mxu0 }
 0x105   :  { %v212_v43 = vadd.f32 %v211_v41, %v70_v39  ;;  %v218_v51 = vmax.f32 %v210_v45, 0.0 }
 0x106   :  { %v213_v42 = vpop.f32.mrf.mxu0 }
 0x107   :  { %v214_v44 = vadd.f32 %v213_v42, %v66_v40  ;;  %v219_v49 = vmax.f32 %v212_v43, 0.0 }
 0x108   :  { %v215_v46 = vpop.f32.mrf.mxu0 }
 0x109   :  { %v216_v47 = vadd.f32 %v215_v46, %v70_v39  ;;  %v220_v48 = vmax.f32 %v214_v44, 0.0 }
 0x10b   :  { %v221_v50 = vmax.f32 %v216_v47, 0.0  ;;  %v224_v53 = vpack.c.bf16 %v220_v48, %v218_v51 }
 0x10d   :  { %v225_v52 = vpack.c.bf16 %v221_v50, %v219_v49 }
 0x10f   :  { %354 = vmatprep.mubr.bf16.mxu1 %v225_v52 }
 0x110   :  { %355 = vmatmul.mubr.bf16.vlgmr.msra.gmra.mxu1 %v224_v53 }
 0x1d0   :  { %v356_v55 = vpop.f32.mrf.mxu1 }
 0x1d1   :  { %v379_v56 = vadd.f32 %v420_v54, %v356_v55 }
 0x1d2   :  { %v358_v57 = vpop.f32.mrf.mxu1 }
 0x1d3   :  { %381 = vst [vmem:[%s626_s5] sm:$0xff] %v379_v56 }
 0x1d4   :  { %v359_v58 = vpop.f32.mrf.mxu1 }
 0x1d5   :  { %v380_v59 = vadd.f32 %v420_v54, %v359_v58 }
 0x1d6   :  { %v361_v60 = vpop.f32.mrf.mxu1 }
 0x1d7   :  { %382 = vst [vmem:[%s626_s5 + $0x8] sm:$0xff] %v380_v59 }

</bundles_post_ra>
